<compile_context>
chip_gen: v6e
topology: v6e:2x2x1
jax: 0.10.0
libtpu: 0.0.40
codegen_flags: <defaults>
</compile_context>

<pallas_src>
import functools

import jax
import jax.numpy as jnp
from jax import lax
from jax.experimental import pallas as pl
from jax.experimental.pallas import tpu as pltpu

_BN_EPS = 1e-5
_LN_EPS = 1e-5
_LANE = 128
_SUBLANE = 8


def _round_up(n, m):
    return ((n + m - 1) // m) * m


def _pad_axis(a, axis, multiple):
    pad = (-a.shape[axis]) % multiple
    if pad == 0:
        return a
    widths = [(0, 0)] * a.ndim
    widths[axis] = (0, pad)
    return jnp.pad(a, widths)


def _block_kernel(*refs, apply_ln, inv_fout):
    """Fused Block: relu(layernorm?(x @ W' + b')) for one batch tile.

    Eval-mode BatchNorm is already folded into W'/b' by the wrapper. Padded feature
    columns of W'/b' (and ln gamma/beta) are zero, so padded output lanes are exactly 0.
    """
    if apply_ln:
        x_ref, wT_ref, b_ref, ln_g_ref, ln_b_ref, o_ref = refs
    else:
        x_ref, wT_ref, b_ref, o_ref = refs

    # MXU matmul: bf16 inputs, f32 accumulation.
    y = jnp.dot(x_ref[...], wT_ref[...], preferred_element_type=jnp.float32)
    y = y + b_ref[...]                     # (tb, Fout_p) + (1, Fout_p), f32 epilogue

    if apply_ln:
        # One-pass LayerNorm statistics over the *real* feature count. Padded columns of y
        # are exactly 0, so plain sums over the padded tile are correct.
        s1 = jnp.sum(y, axis=-1, keepdims=True)
        s2 = jnp.sum(y * y, axis=-1, keepdims=True)
        mean = s1 * inv_fout
        var = jnp.maximum(s2 * inv_fout - mean * mean, 0.0)
        y = (y - mean) * lax.rsqrt(var + _LN_EPS) * ln_g_ref[...] + ln_b_ref[...]

    y = jnp.maximum(y, 0.0)                # ReLU
    # Dropout: identity in eval mode.
    # TODO(synk): training-mode dropout (random masking via pltpu.prng_*) not implemented.

    o_ref[...] = y.astype(o_ref.dtype)


def block_forward(x, params, *, apply_bn, apply_ln, tb=128):
    """Run one Block. x: (B, Fin) float32. Returns (B, Fout) float32."""
    B, Fin = x.shape
    Fout = params["wT"].shape[1]

    # ---- Fold eval-mode BatchNorm1d into the Linear weight/bias (trace-time, f32). ----
    wT = params["wT"].astype(jnp.float32)
    b = params.get("b")
    b = jnp.zeros((1, Fout), jnp.float32) if b is None else b.reshape(1, Fout).astype(jnp.float32)
    if apply_bn:
        # TODO(synk): eval-mode only; training-mode BatchNorm1d (batch statistics across the
        #             whole batch) is not implemented.
        scale = params["bn_g"].reshape(1, Fout) * lax.rsqrt(
            params["bn_v"].reshape(1, Fout) + _BN_EPS)
        wT = wT * scale
        b = (b - params["bn_m"].reshape(1, Fout)) * scale + params["bn_b"].reshape(1, Fout)

    # ---- Pad to MXU/lane friendly shapes and pick the batch tile. ----
    Fin_p = _round_up(Fin, _LANE)
    Fout_p = _round_up(Fout, _LANE)
    tb_eff = _round_up(min(tb, _round_up(B, _SUBLANE)), _SUBLANE)
    B_p = _round_up(B, tb_eff)

    x_p = _pad_axis(_pad_axis(x, 1, _LANE), 0, tb_eff).astype(jnp.bfloat16)
    wT_p = _pad_axis(_pad_axis(wT, 0, _LANE), 1, _LANE).astype(jnp.bfloat16)
    b_p = _pad_axis(b, 1, _LANE)

    args = [x_p, wT_p, b_p]
    in_specs = [
        pl.BlockSpec((tb_eff, Fin_p), lambda i: (i, 0)),   # x: tile over batch
        pl.BlockSpec((Fin_p, Fout_p), lambda i: (0, 0)),   # W^T (folded): whole array
        pl.BlockSpec((1, Fout_p), lambda i: (0, 0)),       # bias (folded)
    ]
    if apply_ln:
        ln_g = _pad_axis(params["ln_g"].reshape(1, Fout).astype(jnp.float32), 1, _LANE)
        ln_b = _pad_axis(params["ln_b"].reshape(1, Fout).astype(jnp.float32), 1, _LANE)
        args += [ln_g, ln_b]
        in_specs += [pl.BlockSpec((1, Fout_p), lambda i: (0, 0)),
                     pl.BlockSpec((1, Fout_p), lambda i: (0, 0))]

    kernel = functools.partial(_block_kernel, apply_ln=apply_ln, inv_fout=1.0 / Fout)

    # VMEM budget: double-buffered x/out tiles + weight + bias/LN vectors, with headroom.
    # TODO(synk): for very large Fin*Fout (>~16M params) add K-tiling of the weight with a
    #             VMEM accumulator instead of loading the whole W^T per grid step.
    vmem_bytes = 2 * (tb_eff * Fin_p * 2          # x tile (bf16), double-buffered
                      + tb_eff * Fout_p * 4       # out tile (f32), double-buffered
                      + Fin_p * Fout_p * 2        # weight (bf16)
                      + 4 * Fout_p * 4) + (2 << 20)
    vmem_limit = int(min(max(vmem_bytes, 32 << 20), 64 << 20))

    out = pl.pallas_call(
        kernel,
        out_shape=jax.ShapeDtypeStruct((B_p, Fout_p), jnp.float32),
        grid_spec=pltpu.PrefetchScalarGridSpec(
            num_scalar_prefetch=0,
            grid=(B_p // tb_eff,),
            in_specs=in_specs,
            out_specs=pl.BlockSpec((tb_eff, Fout_p), lambda i: (i, 0)),
        ),
        compiler_params=pltpu.CompilerParams(
            dimension_semantics=("parallel",),
            vmem_limit_bytes=vmem_limit,
        ),
    )(*args)

    return out[:B, :Fout]


if __name__ == "__main__":
    key = jax.random.PRNGKey(0)
    kx, kw, kb, kg = jax.random.split(key, 4)

    # Block(in_features=32, out_features=64, bias=True, dropout=None, ...)
    B, FIN, FOUT = 8, 32, 64
    bound = 1.0 / (FIN ** 0.5)

    x = jax.random.normal(kx, (B, FIN), jnp.float32)
    params = {
        "wT": jax.random.uniform(kw, (FIN, FOUT), jnp.float32, -bound, bound),  # W^T
        "b": jax.random.uniform(kb, (1, FOUT), jnp.float32, -bound, bound),
        "bn_g": jax.random.uniform(kg, (FOUT,), jnp.float32, 0.5, 1.5),
        "bn_b": jnp.linspace(-0.1, 0.1, FOUT, dtype=jnp.float32),
        "bn_m": jnp.linspace(-0.2, 0.2, FOUT, dtype=jnp.float32),
        "bn_v": jnp.linspace(0.5, 1.5, FOUT, dtype=jnp.float32),
        "ln_g": jnp.linspace(0.9, 1.1, FOUT, dtype=jnp.float32),
        "ln_b": jnp.linspace(-0.05, 0.05, FOUT, dtype=jnp.float32),
    }

    def reference(x, p, apply_bn, apply_ln):
        y = x @ p["wT"] + p["b"]
        if apply_bn:
            y = (y - p["bn_m"]) * lax.rsqrt(p["bn_v"] + _BN_EPS) * p["bn_g"] + p["bn_b"]
        if apply_ln:
            m = y.mean(-1, keepdims=True)
            v = ((y - m) ** 2).mean(-1, keepdims=True)
            y = (y - m) * lax.rsqrt(v + _LN_EPS) * p["ln_g"] + p["ln_b"]
        return jnp.maximum(y, 0.0)

    # Exercise both the LayerNorm path and the (folded) BatchNorm path.
    for apply_bn, apply_ln in [(False, True), (True, False)]:
        out = block_forward(x, params, apply_bn=apply_bn, apply_ln=apply_ln)
        jax.block_until_ready(out)
        ref = reference(x, params, apply_bn, apply_ln)
        assert out.shape == (B, FOUT)
        # Tolerance accounts for bf16 matmul inputs (f32 accumulation / epilogue).
        assert jnp.allclose(out, ref, atol=3e-2, rtol=3e-2), \
            float(jnp.max(jnp.abs(out - ref)))

    print("KERNEL_OK")
</pallas_src>

<mosaic_0001>
module attributes {stable_mosaic.version = 11 : i64} {
  func.func @_block_kernel(%arg0: i32, %arg1: memref<8x128xbf16, #tpu.memory_space<vmem>>, %arg2: memref<128x128xbf16, #tpu.memory_space<vmem>>, %arg3: memref<1x128xf32, #tpu.memory_space<vmem>>, %arg4: memref<1x128xf32, #tpu.memory_space<vmem>>, %arg5: memref<1x128xf32, #tpu.memory_space<vmem>>, %arg6: memref<8x128xf32, #tpu.memory_space<vmem>>) attributes {dimension_semantics = [#tpu.dimension_semantics<parallel>], iteration_bounds = array<i64: 1>, scalar_prefetch = 0 : i64, scratch_operands = 0 : i64, tpu.core_type = #tpu.core_type<tc>, window_params = [{transform_indices = @transform_0, window_bounds = array<i64: 8, 128>}, {pipeline_mode = #tpu.pipeline_mode<synchronous>, transform_indices = @transform_1, window_bounds = array<i64: 128, 128>}, {pipeline_mode = #tpu.pipeline_mode<synchronous>, transform_indices = @transform_2, window_bounds = array<i64: 1, 128>}, {pipeline_mode = #tpu.pipeline_mode<synchronous>, transform_indices = @transform_3, window_bounds = array<i64: 1, 128>}, {pipeline_mode = #tpu.pipeline_mode<synchronous>, transform_indices = @transform_4, window_bounds = array<i64: 1, 128>}, {transform_indices = @transform_5, window_bounds = array<i64: 8, 128>}]} {
    %c0 = arith.constant 0 : index
    %c0_0 = arith.constant 0 : index
    %0 = vector.load %arg1[%c0, %c0_0] : memref<8x128xbf16, #tpu.memory_space<vmem>>, vector<8x128xbf16>
    %c0_1 = arith.constant 0 : index
    %c0_2 = arith.constant 0 : index
    %1 = vector.load %arg2[%c0_1, %c0_2] : memref<128x128xbf16, #tpu.memory_space<vmem>>, vector<128x128xbf16>
    %cst = arith.constant dense<0.000000e+00> : vector<8x128xf32>
    %2 = tpu.matmul %0, %1, %cst {dimension_numbers = #tpu.dot_dimension_numbers<[1], [0], [0], [1], [0, 0, 1, 1], [], []>} : vector<8x128xbf16>, vector<128x128xbf16>, vector<8x128xf32> -> vector<8x128xf32>
    %c0_3 = arith.constant 0 : index
    %c0_4 = arith.constant 0 : index
    %3 = vector.load %arg3[%c0_3, %c0_4] : memref<1x128xf32, #tpu.memory_space<vmem>>, vector<1x128xf32>
    %4 = vector.broadcast %3 : vector<1x128xf32> to vector<8x128xf32>
    %5 = arith.addf %2, %4 : vector<8x128xf32>
    %cst_5 = arith.constant dense<0.000000e+00> : vector<8xf32>
    %6 = vector.multi_reduction <add>, %5, %cst_5 [1] : vector<8x128xf32> to vector<8xf32>
    %7 = vector.shape_cast %6 : vector<8xf32> to vector<8x1xf32>
    %8 = arith.mulf %5, %5 : vector<8x128xf32>
    %cst_6 = arith.constant dense<0.000000e+00> : vector<8xf32>
    %9 = vector.multi_reduction <add>, %8, %cst_6 [1] : vector<8x128xf32> to vector<8xf32>
    %10 = vector.shape_cast %9 : vector<8xf32> to vector<8x1xf32>
    %cst_7 = arith.constant 1.562500e-02 : f32
    %11 = vector.broadcast %cst_7 : f32 to vector<8x1xf32>
    %12 = arith.mulf %7, %11 : vector<8x1xf32>
    %cst_8 = arith.constant 1.562500e-02 : f32
    %13 = vector.broadcast %cst_8 : f32 to vector<8x1xf32>
    %14 = arith.mulf %10, %13 : vector<8x1xf32>
    %15 = arith.mulf %12, %12 : vector<8x1xf32>
    %16 = arith.subf %14, %15 : vector<8x1xf32>
    %cst_9 = arith.constant 0.000000e+00 : f32
    %17 = vector.broadcast %cst_9 : f32 to vector<8x1xf32>
    %18 = arith.maximumf %16, %17 : vector<8x1xf32>
    %19 = vector.broadcast %12 : vector<8x1xf32> to vector<8x128xf32>
    %20 = arith.subf %5, %19 : vector<8x128xf32>
    %cst_10 = arith.constant 9.99999974E-6 : f32
    %21 = vector.broadcast %cst_10 : f32 to vector<8x1xf32>
    %22 = arith.addf %18, %21 : vector<8x1xf32>
    %23 = math.rsqrt %22 : vector<8x1xf32>
    %24 = vector.broadcast %23 : vector<8x1xf32> to vector<8x128xf32>
    %25 = arith.mulf %20, %24 : vector<8x128xf32>
    %c0_11 = arith.constant 0 : index
    %c0_12 = arith.constant 0 : index
    %26 = vector.load %arg4[%c0_11, %c0_12] : memref<1x128xf32, #tpu.memory_space<vmem>>, vector<1x128xf32>
    %27 = vector.broadcast %26 : vector<1x128xf32> to vector<8x128xf32>
    %28 = arith.mulf %25, %27 : vector<8x128xf32>
    %c0_13 = arith.constant 0 : index
    %c0_14 = arith.constant 0 : index
    %29 = vector.load %arg5[%c0_13, %c0_14] : memref<1x128xf32, #tpu.memory_space<vmem>>, vector<1x128xf32>
    %30 = vector.broadcast %29 : vector<1x128xf32> to vector<8x128xf32>
    %31 = arith.addf %28, %30 : vector<8x128xf32>
    %cst_15 = arith.constant 0.000000e+00 : f32
    %32 = vector.broadcast %cst_15 : f32 to vector<8x128xf32>
    %33 = arith.maximumf %31, %32 : vector<8x128xf32>
    %c0_16 = arith.constant 0 : index
    %c0_17 = arith.constant 0 : index
    %34 = vector.load %arg6[%c0_16, %c0_17] : memref<8x128xf32, #tpu.memory_space<vmem>>, vector<8x128xf32>
    tpu.vector_store %arg6[%c0_16, %c0_17], %33 {strides = array<i32>} : memref<8x128xf32, #tpu.memory_space<vmem>>, vector<8x128xf32>,
    return
  }
  func.func @transform_0(%arg0: i32) -> (i32, i32) {
    %c0_i32 = arith.constant 0 : i32
    %c0_i32_0 = arith.constant 0 : i32
    return %arg0, %c0_i32 : i32, i32
  }
  func.func @transform_1(%arg0: i32) -> (i32, i32) {
    %c0_i32 = arith.constant 0 : i32
    %c0_i32_0 = arith.constant 0 : i32
    %c0_i32_1 = arith.constant 0 : i32
    return %c0_i32, %c0_i32_0 : i32, i32
  }
  func.func @transform_2(%arg0: i32) -> (i32, i32) {
    %c0_i32 = arith.constant 0 : i32
    %c0_i32_0 = arith.constant 0 : i32
    %c0_i32_1 = arith.constant 0 : i32
    return %c0_i32, %c0_i32_0 : i32, i32
  }
  func.func @transform_3(%arg0: i32) -> (i32, i32) {
    %c0_i32 = arith.constant 0 : i32
    %c0_i32_0 = arith.constant 0 : i32
    %c0_i32_1 = arith.constant 0 : i32
    return %c0_i32, %c0_i32_0 : i32, i32
  }
  func.func @transform_4(%arg0: i32) -> (i32, i32) {
    %c0_i32 = arith.constant 0 : i32
    %c0_i32_0 = arith.constant 0 : i32
    %c0_i32_1 = arith.constant 0 : i32
    return %c0_i32, %c0_i32_0 : i32, i32
  }
  func.func @transform_5(%arg0: i32) -> (i32, i32) {
    %c0_i32 = arith.constant 0 : i32
    %c0_i32_0 = arith.constant 0 : i32
    return %arg0, %c0_i32 : i32, i32
  }
}

</mosaic_0001>

<bundles_post_ra>
// kernel: tpu_custom_call.1
= control target key start
LH: loop header
LB: loop body
LE: loop exit
PB: predicated region body
PF: predicated region fallthrough
CT: control target
= control target key end

     0   :  { %10 = vsyncpa [#allocation3], 0  ;;  %s386_s0 = inlined_call_operand.hbm [shape: bf16[8,128], index: 0, kind: input, shape index: {}]   ;;  %s387_s1 = inlined_call_operand.hbm [shape: bf16[128,128], index: 1, kind: input, shape index: {}]   ;;  %s388_s2 = inlined_call_operand.vmem [shape: f32[1,128], index: 2, kind: input, shape index: {}]   ;;  %s389_s3 = inlined_call_operand.vmem [shape: f32[1,128], index: 3, kind: input, shape index: {}]   ;;  %s390_s4 = inlined_call_operand.vmem [shape: f32[1,128], index: 4, kind: input, shape index: {}]   ;;  %s391_s5 = inlined_call_operand.hbm [shape: f32[8,128], index: 5, kind: output, shape index: {}]  }
   0x1   :  { %11 = vsyncpa [#allocation6], 0 }
   0x2   :  { %12 = vsyncpa [#allocation4], 0  ;;  %s331_s18 = smov [#allocation2]   ;;  %s332_s20 = smov [#allocation5]  }
   0x3   :  { %s19_s19 = sshll.u32 %s331_s18, 4  ;;  %s28_s21 = sshll.u32 %s332_s20, 4  ;;  %s20_s19 = int_to_ptr.vmem [resolvable:$true] %s19_s19  ;;  %s29_s21 = int_to_ptr.vmem [resolvable:$true] %s28_s21 }
   0x4   :  { %s273_s22 = scalar_lea.vmem %s20_s19, 64  ;;  %p278_p1 = scmp.lt.s32.totalorder %s20_s19, %s20_s19 }
   0x5   :  { %p274_p0 = scmp.ne.s32.totalorder %s20_s19, %s273_s22  ;;  %p279_p2 = scmp.lt.s32.totalorder %s273_s22, %s273_s22 }
   0x7   :  { %p280_p3 = por %p279_p2, %p278_p1 }
   0x9   :  { %p281_p4 = pnand %p280_p3, %p274_p0 }
   0xb   :  { %284 = shalt.err (!%p281_p4)
}
   0xc   :  { %22 = dma.hbm_to_vmem [thread:$0]  %s386_s0, 64, %s20_s19, [#allocation3]  }
   0xd   :  { %s293_s25 = scalar_lea.vmem %s29_s21, 1024  ;;  %p298_p6 = scmp.lt.s32.totalorder %s29_s21, %s29_s21 }
   0xe   :  { %p294_p5 = scmp.ne.s32.totalorder %s29_s21, %s293_s25  ;;  %p299_p7 = scmp.lt.s32.totalorder %s293_s25, %s293_s25 }
  0x10   :  { %p300_p8 = por %p299_p7, %p298_p6 }
  0x12   :  { %p301_p9 = pnand %p300_p8, %p294_p5 }
  0x14   :  { %304 = shalt.err (!%p301_p9)
}
  0x15   :  { %s333_s26 = smov 64   ;;  %s334_s27 = smov 4  }
  0x16   :  { %34 = dma.hbm_to_vmem [thread:$0]  %s387_s1, 1024, %s29_s21, [#allocation6], %s333_s26, %s333_s26, %s334_s27  }
  0x17   :  { %325 = dma.done.wait [#allocation3], 64  }
  0x18   :  { %326 = vsyncadd [#allocation3], 4294967232 }
  0x19   :  { %327 = dma.done.wait [#allocation6], 1024  }
  0x1a   :  { %328 = vsyncadd [#allocation6], 4294966272  ;;  %v335_v0 = vmov 0.0   ;;  %vm336_vm0 = vmmov 0   ;;  %v255_v1 = vld [vmem:[#allocation5 + $0x38] sm:$0xff]   ;;  %v256_v2 = vld [vmem:[#allocation5 + $0x30] sm:$0xff]  }
  0x1b   :  { %228 = vmatprep.subr.bf16.mxu0 %v335_v0  ;;  %244 = vmatprep.mubr.msk.bf16.mxu0 %vm336_vm0, %v335_v0  ;;  %v257_v3 = vld [vmem:[#allocation5 + $0x28] sm:$0xff]   ;;  %v258_v4 = vld [vmem:[#allocation5 + $0x20] sm:$0xff]   ;;  %v259_v5 = vld [vmem:[#allocation5 + $0x18] sm:$0xff]   ;;  %s337_s8 = smov [#allocation7]  }
  0x1c   :  { %229 = vmatpush3.bf16.msra.mxu0 %v255_v1  ;;  %v260_v6 = vld [vmem:[#allocation5 + $0x10] sm:$0xff]   ;;  %v261_v7 = vld [vmem:[#allocation5 + $0x8] sm:$0xff]   ;;  %v262_v8 = vld [vmem:[#allocation5] sm:$0xff]   ;;  %s198_s9 = sshll.u32 %s337_s8, 4  ;;  %s199_s9 = int_to_ptr.vmem [resolvable:$true] %s198_s9 }
  0x1d   :  { %230 = vmatprep.subr.bf16.mxu0 %v335_v0  ;;  %v48_v9 = vld [vmem:[#allocation2] sm:$0xf]  ;;  %s305_s10 = scalar_lea.vmem %s199_s9, 128  ;;  %p310_p11 = scmp.lt.s32.totalorder %s199_s9, %s199_s9 }
  0x1e   :  { %v208_v10 = vld [vmem:[%s388_s2] ss:$0 sm:$0xff]  ;;  %p306_p10 = scmp.ne.s32.totalorder %s199_s9, %s305_s10  ;;  %p311_p12 = scmp.lt.s32.totalorder %s305_s10, %s305_s10 }
  0x1f   :  { %v217_v27 = vld [vmem:[%s389_s3] ss:$0 sm:$0xff] }
  0x20   :  { %231 = vmatpush3.bf16.msra.mxu0 %v256_v2  ;;  %v218_v29 = vld [vmem:[%s390_s4] ss:$0 sm:$0xff]  ;;  %p312_p13 = por %p311_p12, %p310_p11 }
  0x21   :  { %232 = vmatprep.subr.bf16.mxu0 %v335_v0 }
  0x22   :  { %p313_p0 = pnand %p312_p13, %p306_p10 }
  0x24   :  { %233 = vmatpush3.bf16.msra.mxu0 %v257_v3 }
  0x25   :  { %234 = vmatprep.subr.bf16.mxu0 %v335_v0 }
  0x28   :  { %235 = vmatpush3.bf16.msra.mxu0 %v258_v4 }
  0x29   :  { %236 = vmatprep.subr.bf16.mxu0 %v335_v0 }
  0x2c   :  { %237 = vmatpush3.bf16.msra.mxu0 %v259_v5 }
  0x2d   :  { %238 = vmatprep.subr.bf16.mxu0 %v335_v0 }
  0x30   :  { %239 = vmatpush3.bf16.msra.mxu0 %v260_v6 }
  0x31   :  { %240 = vmatprep.subr.bf16.mxu0 %v335_v0 }
  0x34   :  { %241 = vmatpush3.bf16.msra.mxu0 %v261_v7 }
  0x35   :  { %242 = vmatprep.subr.bf16.mxu0 %v335_v0 }
  0x38   :  { %243 = vmatpush3.bf16.msra.mxu0 %v262_v8 }
  0x3b   :  { %245 = vmatmul.mubr.bf16.vlgmr.msra.gmra.mxu0 %v48_v9 }
  0xfb   :  { %v154_v11 = vpop.f32.mrf.mxu0 }
  0xfc   :  { %v155_v12 = vadd.f32 %v208_v10, %v154_v11 }
  0xfd   :  { %v246_v13 = vpop.f32.mrf.mxu0 }
  0xfe   :  { %160 = vadd.xlane.f32.xlu0 %v155_v12  ;;  %v162_v15 = vmul.f32 %v155_v12, %v155_v12 }
  0xff   :  { %v157_v14 = vpop.f32.mrf.mxu0 }
 0x101   :  { %v247_v16 = vpop.f32.mrf.mxu0 }
 0x102   :  { %163 = vadd.xlane.f32.xlu0 %v162_v15 }
 0x187   :  { %v161_v17 = vpop.xlane.xlu0 %160 }
 0x188   :  { %v165_v18 = vmul.f32 0.015625, %v161_v17 }
 0x18a   :  { %v167_v20 = vmul.f32 %v165_v18, %v165_v18  ;;  %v170_v25 = vsub.f32 %v155_v12, %v165_v18 }
 0x18b   :  { %v164_v19 = vpop.xlane.xlu0 %163 }
 0x18c   :  { %v166_v21 = vmul.f32 0.015625, %v164_v19 }
 0x18e   :  { %v168_v22 = vsub.f32 %v166_v21, %v167_v20 }
 0x190   :  { %v169_v23 = vmax.f32 %v168_v22, 0.0 }
 0x192   :  { %v171_v24 = vadd.f32 1e-05, %v169_v23 }
 0x194   :  { %263 = vrsqrt.f32 %v171_v24 }
 0x1a1   :  { %v264_v26 = vpop.eup %263 }
 0x1a2   :  { %v173_v28 = vmul.f32 %v264_v26, %v170_v25 }
 0x1a4   :  { %v181_v30 = vmul.f32 %v217_v27, %v173_v28 }
 0x1a6   :  { %v189_v31 = vadd.f32 %v218_v29, %v181_v30 }
 0x1a8   :  { %v190_v32 = vmax.f32 %v189_v31, 0.0 }
 0x1aa   :  { %191 = vst [vmem:[#allocation7] sm:$0xff] %v190_v32 }
 0x1ab   :  { %316 = shalt.err (!%p313_p0)
}
 0x1ac   :  { %201 = dma.vmem_to_hbm [thread:$0]  %s199_s9, 128, %s391_s5, [#allocation4]  }
 0x1ad   :  { %329 = dma.done.wait [#allocation4], 128  }
 0x1ae   :  { %330 = vsyncadd [#allocation4], 4294967168 }
 0x1af   :  { %205 = vsyncpa [#allocation3], 1 }
 0x1b0   :  { %206 = vsyncpa [#allocation6], 1 }
 0x1b1   :  { %207 = vsyncpa [#allocation4], 1 }

</bundles_post_ra>
